<compile_context>
chip_gen: v7x
topology: tpu7x:2x2x1
jax: 0.10.0
libtpu: 0.0.40
codegen_flags: <defaults>
</compile_context>

<pallas_src>
import functools

import jax
import jax.numpy as jnp
from jax.experimental import pallas as pl
from jax.experimental.pallas import tpu as pltpu


def _round_up(v, m):
    return (v + m - 1) // m * m


def _disc_kernel_general(bias_ref, x_ref, a1_ref, a2_ref, w_ref, o_ref, *,
                         matmul_dtype):
    # bias_ref: SMEM (1,)   f32
    # x_ref:    VMEM (TB,D) f32           -- batch tile, pipelined (double-buffered)
    # a1_ref:   VMEM (D,D)  matmul_dtype  -- pre-cast in wrapper, Buffered(1)
    # a2_ref:   VMEM (D,D)  matmul_dtype  -- Buffered(1)
    # w_ref:    VMEM (1,D)  f32           -- Buffered(1)
    # o_ref:    VMEM (1,TB) f32           -- lane-dense output tile
    x = x_ref[...]
    x_sq = x * x
    xa1 = jnp.dot(x.astype(matmul_dtype), a1_ref[...],
                  preferred_element_type=jnp.float32)
    xa2 = jnp.dot(x_sq.astype(matmul_dtype), a2_ref[...],
                  preferred_element_type=jnp.float32)
    # Fused VPU accumulation -> a single XLU lane reduce (instead of three).
    acc = xa1 * x + xa2 * x_sq + x * w_ref[...]
    out = jnp.sum(acc, axis=-1) - bias_ref[0]
    o_ref[0, :] = out.astype(o_ref.dtype)


def _disc_kernel_blockdiag(bias_ref, x_ref, ablk_ref, w_ref, o_ref, *,
                           matmul_dtype):
    # Small-D path (2*D <= 128): one (TB,2D)@(2D,2D) MXU pass against
    # block_diag(A1, A2) replaces two under-filled (TB,D)@(D,D) passes with
    # bit-identical math (zero off-diagonal blocks contribute nothing).
    # ablk_ref: VMEM (2D,2D) matmul_dtype ; w_ref: VMEM (1,2D) f32 (zero-padded).
    x = x_ref[...]
    lhs = jnp.concatenate([x, x * x], axis=-1)            # (TB, 2D) f32
    la = jnp.dot(lhs.astype(matmul_dtype), ablk_ref[...],
                 preferred_element_type=jnp.float32)      # (TB, 2D) f32
    acc = lhs * (la + w_ref[...])                         # quad + linear, fused
    out = jnp.sum(acc, axis=-1) - bias_ref[0]             # one lane reduce
    o_ref[0, :] = out.astype(o_ref.dtype)


def discriminator_sigma_complex_forward(x, params, params2, param_linear, bias,
                                        *, block_b=None,
                                        matmul_dtype=jnp.bfloat16,
                                        fuse_small_d=None):
    """x: (B, D) f32, params/params2: (D, D) f32 (symmetric),
    param_linear: (D,) f32, bias: (1,) f32  ->  (B,) f32."""
    B, D = x.shape

    # Batch tile sized with D so one x tile is >= ~1 MiB (step-overhead
    # amortization at small D); rounded to 128 for the lane-dense (1, TB)
    # output tiling.  A batch that fits in one tile is taken whole
    # (block == full array satisfies the (8,128) rule).
    if block_b is None:
        block_b = _round_up(max((1 << 20) // (4 * D), 512), 128)
    tb = B if B <= block_b else block_b
    grid = (pl.cdiv(B, tb),)

    if fuse_small_d is None:
        fuse_small_d = (2 * D) <= 128

    wdt_bytes = jnp.dtype(matmul_dtype).itemsize

    if fuse_small_d:
        d2 = 2 * D
        a_blk = jnp.zeros((d2, d2), jnp.float32)
        a_blk = a_blk.at[:D, :D].set(params).at[D:, D:].set(params2)
        a_blk = a_blk.astype(matmul_dtype)                      # pre-cast once
        w2d = jnp.concatenate(
            [param_linear.astype(jnp.float32), jnp.zeros((D,), jnp.float32)]
        ).reshape(1, d2)
        kernel = functools.partial(_disc_kernel_blockdiag,
                                   matmul_dtype=matmul_dtype)
        weight_args = (a_blk, w2d)
        weight_specs = [
            pl.BlockSpec((d2, d2), lambda i: (0, 0),
                         pipeline_mode=pl.Buffered(1)),          # A_blk resident
            pl.BlockSpec((1, d2), lambda i: (0, 0),
                         pipeline_mode=pl.Buffered(1)),          # w resident
        ]
        weight_bytes = d2 * d2 * wdt_bytes + d2 * 4
    else:
        a1 = params.astype(matmul_dtype)                         # pre-cast once
        a2 = params2.astype(matmul_dtype)
        w2d = param_linear.astype(jnp.float32).reshape(1, D)
        kernel = functools.partial(_disc_kernel_general,
                                   matmul_dtype=matmul_dtype)
        weight_args = (a1, a2, w2d)
        weight_specs = [
            pl.BlockSpec((D, D), lambda i: (0, 0),
                         pipeline_mode=pl.Buffered(1)),          # A1 resident
            pl.BlockSpec((D, D), lambda i: (0, 0),
                         pipeline_mode=pl.Buffered(1)),          # A2 resident
            pl.BlockSpec((1, D), lambda i: (0, 0),
                         pipeline_mode=pl.Buffered(1)),          # w  resident
        ]
        weight_bytes = 2 * D * D * wdt_bytes + D * 4

    # VMEM budget: double-buffered x tile + single-buffered weights +
    # double-buffered (1, tb) output, plus headroom for compiler scratch.
    # (Never blanket-request 64 MiB: that is the whole physical VMEM of a
    # v7x TensorCore.)
    footprint = 2 * tb * D * 4 + weight_bytes + 2 * tb * 4
    vmem_limit = min(max(footprint + footprint // 4 + (2 << 20), 16 << 20),
                     56 << 20)

    out = pl.pallas_call(
        kernel,
        out_shape=jax.ShapeDtypeStruct((1, B), jnp.float32),
        grid=grid,
        in_specs=[
            pl.BlockSpec(memory_space=pltpu.MemorySpace.SMEM),   # bias scalar
            pl.BlockSpec((tb, D), lambda i: (i, 0)),             # x: batch-tiled
        ] + weight_specs,
        out_specs=pl.BlockSpec((1, tb), lambda i: (0, i)),       # lane-dense out
        compiler_params=pltpu.CompilerParams(
            dimension_semantics=("parallel",),                   # batch across TCs
            vmem_limit_bytes=vmem_limit,
        ),
    )(bias, x, *weight_args)
    return out.reshape(B)


def init_params(key, data_dim):
    """Deterministic re-implementation of Discriminator_sigma_complex.__init__."""
    k1, k2, k3 = jax.random.split(key, 3)
    m1 = jax.random.normal(k1, (data_dim, data_dim), dtype=jnp.float32) * 0.1
    params = 0.5 * (m1 + m1.T)
    m2 = jax.random.normal(k2, (data_dim, data_dim), dtype=jnp.float32) * 0.1
    params2 = 0.5 * (m2 + m2.T)
    param_linear = jax.random.normal(k3, (data_dim,), dtype=jnp.float32)
    bias = jnp.zeros((1,), dtype=jnp.float32)
    return params, params2, param_linear, bias


def _reference(x, params, params2, param_linear, bias):
    x_sq = x * x
    q1 = jnp.sum((x @ params) * x, axis=-1)
    q2 = jnp.sum((x_sq @ params2) * x_sq, axis=-1)
    lin = jnp.sum(x * param_linear[None, :], axis=-1)
    return q1 + q2 + lin - bias[0]


if __name__ == "__main__":
    key = jax.random.PRNGKey(0)
    k_param, k_x, k_x2 = jax.random.split(key, 3)

    data_dim = 32
    batch = 16

    params, params2, param_linear, bias = init_params(k_param, data_dim)
    x = jax.random.normal(k_x, (batch, data_dim), dtype=jnp.float32)
    ref = _reference(x, params, params2, param_linear, bias)

    # 1) General (two-matmul) path, f32 MXU operands: exact-semantics check.
    out_gen = discriminator_sigma_complex_forward(
        x, params, params2, param_linear, bias,
        matmul_dtype=jnp.float32, fuse_small_d=False)
    out_gen = jax.block_until_ready(out_gen)
    assert out_gen.shape == (batch,)
    assert jnp.allclose(out_gen, ref, atol=1e-4, rtol=1e-4)

    # 2) Small-D block-diag fused path (auto at D=32), f32 MXU operands.
    out_blk = discriminator_sigma_complex_forward(
        x, params, params2, param_linear, bias, matmul_dtype=jnp.float32)
    out_blk = jax.block_until_ready(out_blk)
    assert out_blk.shape == (batch,)
    assert jnp.allclose(out_blk, ref, atol=1e-4, rtol=1e-4)

    # 3) Default production path: bf16 MXU operands with f32 accumulation.
    #    Relaxed tolerance for bf16 operand rounding (x**2 widens the range).
    out_bf16 = discriminator_sigma_complex_forward(
        x, params, params2, param_linear, bias)
    out_bf16 = jax.block_until_ready(out_bf16)
    assert out_bf16.shape == (batch,)
    assert jnp.allclose(out_bf16, ref, atol=1e-1, rtol=5e-2)

    # 4) Multi-tile grid (exercises the pipelined batch axis) with a forced
    #    small tile so grid > 1; tb=128 keeps the (8,128) output tiling legal.
    x_big = jax.random.normal(k_x2, (256, data_dim), dtype=jnp.float32)
    ref_big = _reference(x_big, params, params2, param_linear, bias)
    out_big = discriminator_sigma_complex_forward(
        x_big, params, params2, param_linear, bias,
        matmul_dtype=jnp.float32, block_b=128)
    out_big = jax.block_until_ready(out_big)
    assert out_big.shape == (256,)
    assert jnp.allclose(out_big, ref_big, atol=1e-4, rtol=1e-4)

    print("KERNEL_OK")
</pallas_src>

<mosaic_0001>
module attributes {stable_mosaic.version = 11 : i64} {
  func.func @_disc_kernel_general(%arg0: i32, %arg1: memref<1xf32, #tpu.memory_space<smem>>, %arg2: memref<16x32xf32, #tpu.memory_space<vmem>>, %arg3: memref<32x32xf32, #tpu.memory_space<vmem>>, %arg4: memref<32x32xf32, #tpu.memory_space<vmem>>, %arg5: memref<1x32xf32, #tpu.memory_space<vmem>>, %arg6: memref<1x16xf32, #tpu.memory_space<vmem>>) attributes {dimension_semantics = [#tpu.dimension_semantics<parallel>], iteration_bounds = array<i64: 1>, scalar_prefetch = 0 : i64, scratch_operands = 0 : i64, tpu.core_type = #tpu.core_type<tc>, window_params = [{transform_indices = @transform_0, window_bounds = array<i64: 1>}, {transform_indices = @transform_1, window_bounds = array<i64: 16, 32>}, {pipeline_mode = #tpu.pipeline_mode<synchronous>, transform_indices = @transform_2, window_bounds = array<i64: 32, 32>}, {pipeline_mode = #tpu.pipeline_mode<synchronous>, transform_indices = @transform_3, window_bounds = array<i64: 32, 32>}, {pipeline_mode = #tpu.pipeline_mode<synchronous>, transform_indices = @transform_4, window_bounds = array<i64: 1, 32>}, {transform_indices = @transform_5, window_bounds = array<i64: 1, 16>}]} {
    %c0 = arith.constant 0 : index
    %c0_0 = arith.constant 0 : index
    %0 = vector.load %arg2[%c0, %c0_0] : memref<16x32xf32, #tpu.memory_space<vmem>>, vector<16x32xf32>
    %1 = arith.mulf %0, %0 : vector<16x32xf32>
    %c0_1 = arith.constant 0 : index
    %c0_2 = arith.constant 0 : index
    %2 = vector.load %arg3[%c0_1, %c0_2] : memref<32x32xf32, #tpu.memory_space<vmem>>, vector<32x32xf32>
    %cst = arith.constant dense<0.000000e+00> : vector<16x32xf32>
    %3 = tpu.matmul %0, %2, %cst {dimension_numbers = #tpu.dot_dimension_numbers<[1], [0], [0], [1], [0, 0, 1, 1], [], []>} : vector<16x32xf32>, vector<32x32xf32>, vector<16x32xf32> -> vector<16x32xf32>
    %c0_3 = arith.constant 0 : index
    %c0_4 = arith.constant 0 : index
    %4 = vector.load %arg4[%c0_3, %c0_4] : memref<32x32xf32, #tpu.memory_space<vmem>>, vector<32x32xf32>
    %cst_5 = arith.constant dense<0.000000e+00> : vector<16x32xf32>
    %5 = tpu.matmul %1, %4, %cst_5 {dimension_numbers = #tpu.dot_dimension_numbers<[1], [0], [0], [1], [0, 0, 1, 1], [], []>} : vector<16x32xf32>, vector<32x32xf32>, vector<16x32xf32> -> vector<16x32xf32>
    %6 = arith.mulf %3, %0 : vector<16x32xf32>
    %7 = arith.mulf %5, %1 : vector<16x32xf32>
    %8 = arith.addf %6, %7 : vector<16x32xf32>
    %c0_6 = arith.constant 0 : index
    %c0_7 = arith.constant 0 : index
    %9 = vector.load %arg5[%c0_6, %c0_7] : memref<1x32xf32, #tpu.memory_space<vmem>>, vector<1x32xf32>
    %10 = vector.broadcast %9 : vector<1x32xf32> to vector<16x32xf32>
    %11 = arith.mulf %0, %10 : vector<16x32xf32>
    %12 = arith.addf %8, %11 : vector<16x32xf32>
    %cst_8 = arith.constant dense<0.000000e+00> : vector<16xf32>
    %13 = vector.multi_reduction <add>, %12, %cst_8 [1] : vector<16x32xf32> to vector<16xf32>
    %c0_9 = arith.constant 0 : index
    %14 = memref.load %arg1[%c0_9] : memref<1xf32, #tpu.memory_space<smem>>
    %15 = vector.broadcast %14 : f32 to vector<16xf32>
    %16 = arith.subf %13, %15 : vector<16xf32>
    %c0_10 = arith.constant 0 : index
    %c0_11 = arith.constant 0 : index
    %17 = vector.load %arg6[%c0_10, %c0_11] : memref<1x16xf32, #tpu.memory_space<vmem>>, vector<1x16xf32>
    %18 = vector.shape_cast %17 : vector<1x16xf32> to vector<16xf32>
    %19 = vector.shape_cast %16 : vector<16xf32> to vector<1x16xf32>
    tpu.vector_store %arg6[%c0_10, %c0_11], %19 {strides = array<i32>} : memref<1x16xf32, #tpu.memory_space<vmem>>, vector<1x16xf32>,
    return
  }
  func.func @transform_0(%arg0: i32) -> i32 {
    %c0_i32 = arith.constant 0 : i32
    %c0_i32_0 = arith.constant 0 : i32
    return %c0_i32 : i32
  }
  func.func @transform_1(%arg0: i32) -> (i32, i32) {
    %c0_i32 = arith.constant 0 : i32
    %c0_i32_0 = arith.constant 0 : i32
    return %arg0, %c0_i32 : i32, i32
  }
  func.func @transform_2(%arg0: i32) -> (i32, i32) {
    %c0_i32 = arith.constant 0 : i32
    %c0_i32_0 = arith.constant 0 : i32
    %c0_i32_1 = arith.constant 0 : i32
    return %c0_i32, %c0_i32_0 : i32, i32
  }
  func.func @transform_3(%arg0: i32) -> (i32, i32) {
    %c0_i32 = arith.constant 0 : i32
    %c0_i32_0 = arith.constant 0 : i32
    %c0_i32_1 = arith.constant 0 : i32
    return %c0_i32, %c0_i32_0 : i32, i32
  }
  func.func @transform_4(%arg0: i32) -> (i32, i32) {
    %c0_i32 = arith.constant 0 : i32
    %c0_i32_0 = arith.constant 0 : i32
    %c0_i32_1 = arith.constant 0 : i32
    return %c0_i32, %c0_i32_0 : i32, i32
  }
  func.func @transform_5(%arg0: i32) -> (i32, i32) {
    %c0_i32 = arith.constant 0 : i32
    %c0_i32_0 = arith.constant 0 : i32
    return %c0_i32, %arg0 : i32, i32
  }
}

</mosaic_0001>

<bundles_post_ra>
// kernel: tpu_custom_call.1
= control target key start
LH: loop header
LB: loop body
LE: loop exit
PB: predicated region body
PF: predicated region fallthrough
CT: control target
= control target key end

     0   :  { %11 = vsyncpa [#allocation4], 0  ;;  %s566_s0 = inlined_call_operand.<no memory space> [shape: f32[1], index: 0, kind: input, shape index: {}]   ;;  %s567_s1 = inlined_call_operand.hbm [shape: f32[16,32], index: 1, kind: input, shape index: {}]   ;;  %s568_s2 = inlined_call_operand.hbm [shape: f32[32,32], index: 2, kind: input, shape index: {}]   ;;  %s569_s3 = inlined_call_operand.hbm [shape: f32[32,32], index: 3, kind: input, shape index: {}]   ;;  %s570_s4 = inlined_call_operand.vmem [shape: f32[1,32], index: 4, kind: input, shape index: {}]   ;;  %s571_s5 = inlined_call_operand.hbm [shape: f32[1,16], index: 5, kind: output, shape index: {}]  }
   0x1   :  { %12 = vsyncpa [#allocation7], 0 }
   0x2   :  { %13 = vsyncpa [#allocation5], 0  ;;  %s454_s18 = smov [#allocation6]   ;;  %s455_s20 = smov [#allocation3]  }
   0x3   :  { %s33_s19 = sshll.u32 %s454_s18, 4  ;;  %s21_s21 = sshll.u32 %s455_s20, 4  ;;  %s34_s19 = int_to_ptr.vmem [resolvable:$true] %s33_s19  ;;  %s490_s21 = int_to_ptr.vmem [resolvable:$true] %s21_s21 }
   0x4   :  { %s360_s24 = scalar_lea.hbm %s568_s2, 512 }
   0x5   :  { %p361_p0 = scmp.ne.s32.totalorder %s568_s2, %s360_s24  ;;  %p364_p1 = scmp.lt.u32.totalorder %s360_s24, %s568_s2 }
   0x7   :  { %p366_p2 = pnand %p364_p1, %p361_p0 }
   0x9   :  { %369 = shalt.err (!%p366_p2)
}
   0xa   :  { %s370_s29 = scalar_lea.vmem %s34_s19, 512  ;;  %p375_p4 = scmp.lt.s32.totalorder %s34_s19, %s34_s19 }
   0xb   :  { %p371_p3 = scmp.ne.s32.totalorder %s34_s19, %s370_s29  ;;  %p376_p5 = scmp.lt.s32.totalorder %s370_s29, %s370_s29 }
   0xd   :  { %p377_p6 = por %p376_p5, %p375_p4 }
   0xf   :  { %p378_p7 = pnand %p377_p6, %p371_p3 }
  0x11   :  { %381 = shalt.err (!%p378_p7)
}
  0x12   :  { %s456_s30 = smov 128   ;;  %s457_s6 = smov 8  }
  0x13   :  { %39 = dma.hbm_to_vmem [thread:$0]  %s568_s2, 512, %s34_s19, [#allocation7], %s456_s30, %s456_s30, %s457_s6  }
  0x14   :  { %s382_s11 = scalar_lea.hbm %s567_s1, 256 }
  0x15   :  { %p383_p8 = scmp.ne.s32.totalorder %s567_s1, %s382_s11  ;;  %p386_p9 = scmp.lt.u32.totalorder %s382_s11, %s567_s1 }
  0x17   :  { %p388_p10 = pnand %p386_p9, %p383_p8 }
  0x19   :  { %391 = shalt.err (!%p388_p10)
}
  0x1a   :  { %s392_s16 = scalar_lea.vmem %s490_s21, 256  ;;  %p397_p12 = scmp.lt.s32.totalorder %s490_s21, %s490_s21 }
  0x1b   :  { %p393_p11 = scmp.ne.s32.totalorder %s490_s21, %s392_s16  ;;  %p398_p13 = scmp.lt.s32.totalorder %s392_s16, %s392_s16 }
  0x1d   :  { %p399_p0 = por %p398_p13, %p397_p12 }
  0x1f   :  { %p400_p1 = pnand %p399_p0, %p393_p11 }
  0x21   :  { %403 = shalt.err (!%p400_p1)
}
  0x22   :  { %27 = dma.hbm_to_vmem [thread:$0]  %s567_s1, 256, %s490_s21, [#allocation4], %s456_s30, %s456_s30, %s457_s6  }
  0x23   :  { %s458_s18 = smov [#allocation8]   ;;  %s404_s23 = scalar_lea.hbm %s569_s3, 512 }
  0x24   :  { %s45_s19 = sshll.u32 %s458_s18, 4  ;;  %p405_p2 = scmp.ne.s32.totalorder %s569_s3, %s404_s23  ;;  %s46_s19 = int_to_ptr.vmem [resolvable:$true] %s45_s19 }
  0x25   :  { %p408_p3 = scmp.lt.u32.totalorder %s404_s23, %s569_s3 }
  0x27   :  { %p410_p4 = pnand %p408_p3, %p405_p2 }
  0x29   :  { %413 = shalt.err (!%p410_p4)
}
  0x2a   :  { %s414_s28 = scalar_lea.vmem %s46_s19, 512  ;;  %p419_p6 = scmp.lt.s32.totalorder %s46_s19, %s46_s19 }
  0x2b   :  { %p415_p5 = scmp.ne.s32.totalorder %s46_s19, %s414_s28  ;;  %p420_p7 = scmp.lt.s32.totalorder %s414_s28, %s414_s28 }
  0x2d   :  { %p421_p8 = por %p420_p7, %p419_p6 }
  0x2f   :  { %p422_p9 = pnand %p421_p8, %p415_p5 }
  0x31   :  { %425 = shalt.err (!%p422_p9)
}
  0x32   :  { %51 = dma.hbm_to_vmem [thread:$0]  %s569_s3, 512, %s46_s19, [#allocation7], %s456_s30, %s456_s30, %s457_s6  }
  0x33   :  { %448 = dma.done.wait [#allocation4], 256  }
  0x34   :  { %449 = vsyncadd [#allocation4], 4294967040 }
  0x35   :  { %450 = dma.done.wait [#allocation7], 1024  }
  0x36   :  { %451 = vsyncadd [#allocation7], 4294966272  ;;  %v67_v0 = vld [vmem:[#allocation6] sm:$0xff]  ;;  %v68_v1 = vld [vmem:[#allocation6 + $0x8] sm:$0xff]  ;;  %vm71_vm0 = vcmask 261120   ;;  %v267_v33 = vlaneseq  ;;  %v262_v37 = vstv %s566_s0  ;;  %s459_s6 = smov [#allocation9]  }
  0x37   :  { %v153_v2 = vld [vmem:[#allocation8] sm:$0xff]  ;;  %v338_v3 = vpack.c.bf16 %v68_v1, %v67_v0  ;;  %v154_v4 = vld [vmem:[#allocation8 + $0x8] sm:$0xff]  ;;  %v69_v5 = vld [vmem:[#allocation6 + $0x10] sm:$0xff]  ;;  %s289_s7 = sshll.u32 %s459_s6, 4  ;;  %vm278_vm1 = vcmask 130112   ;;  %vm281_vm2 = vcmask 122880   ;;  %s290_s7 = int_to_ptr.vmem [resolvable:$true] %s289_s7 }
  0x38   :  { %v70_v6 = vld [vmem:[#allocation6 + $0x18] sm:$0xff]  ;;  %v346_v7 = vpack.c.bf16 %v154_v4, %v153_v2  ;;  %v155_v9 = vld [vmem:[#allocation8 + $0x10] sm:$0xff]  ;;  %v268_v34 = vand.u32 127, %v267_v33  ;;  %v270_v35 = vshrl.u32 %v267_v33, 7  ;;  %s426_s8 = scalar_lea.vmem %s290_s7, 16  ;;  %s430_s9 = scalar_lea.vmem %s290_s7, 32 }
  0x39   :  { %v342_v8 = vpack.c.bf16 %v70_v6, %v69_v5  ;;  %v156_v10 = vld [vmem:[#allocation8 + $0x18] sm:$0xff]  ;;  %v63_v11 = vld [vmem:[#allocation3] sm:$0xff]  ;;  %339 = vmatprep.subr.bf16.mxu0 %v338_v3  ;;  %p427_p10 = scmp.ne.s32.totalorder %s290_s7, %s426_s8  ;;  %p431_p11 = scmp.lt.s32.totalorder %s290_s7, %s290_s7 }
  0x3a   :  { %v350_v12 = vpack.c.bf16 %v156_v10, %v155_v9  ;;  %324 = vmatprep.mubr.msk.f32.mxu0 %vm71_vm0, %v63_v11  ;;  %v65_v13 = vmul.f32 %v63_v11, %v63_v11  ;;  %347 = vmatprep.subr.bf16.mxu1 %v346_v7  ;;  %v64_v14 = vld [vmem:[#allocation3 + $0x8] sm:$0xff]  ;;  %v303_v17 = vld [vmem:[%s570_s4] ss:$0 sm:$0xff]  ;;  %v273_v36 = vadd.s32 4294967288, %v268_v34  ;;  %v271_v39 = vsub.s32 %v268_v34, %v270_v35  ;;  %p432_p12 = scmp.lt.s32.totalorder %s430_s9, %s426_s8 }
  0x3b   :  { %341 = vmatpush3.bf16.msra.mxu0 %v338_v3  ;;  %349 = vmatpush3.bf16.msra.mxu1 %v346_v7  ;;  %v66_v15 = vmul.f32 %v64_v14, %v64_v14  ;;  %v251_v25 = vmul.f32 %v303_v17, %v63_v11  ;;  %v252_v28 = vmul.f32 %v303_v17, %v64_v14 }
  0x3c   :  { %343 = vmatprep.subr.bf16.mxu0 %v342_v8  ;;  %351 = vmatprep.subr.bf16.mxu1 %v350_v12  ;;  %v276_v41 = vsub.s32 %v273_v36, %v270_v35  ;;  %p433_p13 = por %p432_p12, %p431_p11 }
  0x3d   :  { %335 = vmatprep.mubr.msk.f32.mxu1 %vm71_vm0, %v65_v13 }
  0x3e   :  { %p434_p0 = pnand %p433_p13, %p427_p10 }
  0x3f   :  { %345 = vmatpush3.bf16.msra.mxu0 %v342_v8  ;;  %353 = vmatpush3.bf16.msra.mxu1 %v350_v12 }
  0x42   :  { %325 = vmatmul.mubr.msk.f32.vlgmr.msra.gmra.mrb[0].mxu0 %vm71_vm0, %v64_v14  ;;  %336 = vmatmul.mubr.msk.f32.vlgmr.msra.gmra.mrb[0].mxu1 %vm71_vm0, %v66_v15 }
 0x115   :  { %v326_v16 = vpop.f32.mrb[0].mxu0  ;;  %v337_v19 = vpop.f32.mrb[0].mxu1 }
 0x116   :  { %v239_v18 = vmul.f32 %v326_v16, %v64_v14  ;;  %v144_v20 = vpop.f32.mrb[1].mxu0  ;;  %v241_v21 = vmul.f32 %v337_v19, %v66_v15  ;;  %v229_v23 = vpop.f32.mrb[1].mxu1 }
 0x117   :  { %v238_v22 = vmul.f32 %v144_v20, %v63_v11  ;;  %v240_v24 = vmul.f32 %v229_v23, %v65_v13 }
 0x118   :  { %v243_v26 = vadd.f32 %v241_v21, %v239_v18 }
 0x119   :  { %v242_v27 = vadd.f32 %v240_v24, %v238_v22 }
 0x11a   :  { %v254_v31 = vadd.f32 %v252_v28, %v243_v26 }
 0x11b   :  { %v253_v29 = vadd.f32 %v251_v25, %v242_v27 }
 0x11c   :  { %v258_v32 = vsel %vm71_vm0, %v254_v31, 0.0 }
 0x11d   :  { %v255_v30 = vsel %vm71_vm0, %v253_v29, 0.0 }
 0x11e   :  { %256 = vadd.xlane.f32.xlu0 %v255_v30 }
 0x122   :  { %259 = vadd.xlane.f32.xlu0 %v258_v32 }
 0x1ab   :  { %v257_v38 = vpop.xlane.xlu0 %256 }
 0x1ac   :  { %v263_v40 = vsub.f32 %v257_v38, %v262_v37 }
 0x1ae   :  { %v272_v44 = vrot.slane %v263_v40, %v271_v39 }
 0x1af   :  { %v260_v42 = vpop.xlane.xlu0 %259 }
 0x1b0   :  { %v264_v43 = vsub.f32 %v260_v42, %v262_v37 }
 0x1b2   :  { %v277_v45 = vrot.slane %v264_v43, %v276_v41 }
 0x1b4   :  { %v279_v46 = vsel %vm278_vm1, %v277_v45, %v272_v44 }
 0x1b5   :  { %282 = vst.msk [vmem:[#allocation9] sm:$0x1] %vm281_vm2, %v279_v46 }
 0x1b6   :  { %437 = shalt.err (!%p434_p0)
}
 0x1b7   :  { %s438_s11 = scalar_lea.hbm %s571_s5, 16 }
 0x1b8   :  { %p439_p1 = scmp.ne.s32.totalorder %s571_s5, %s438_s11  ;;  %p442_p2 = scmp.lt.u32.totalorder %s438_s11, %s571_s5 }
 0x1ba   :  { %p444_p3 = pnand %p442_p2, %p439_p1 }
 0x1bc   :  { %447 = shalt.err (!%p444_p3)
}
 0x1bd   :  { %292 = dma.vmem_to_hbm [thread:$0]  %s290_s7, 16, %s571_s5, [#allocation5]  }
 0x1be   :  { %452 = dma.done.wait [#allocation5], 16  }
 0x1bf   :  { %453 = vsyncadd [#allocation5], 4294967280 }
 0x1c0   :  { %296 = vsyncpa [#allocation4], 1 }
 0x1c1   :  { %297 = vsyncpa [#allocation7], 1 }
 0x1c2   :  { %298 = vsyncpa [#allocation5], 1 }

</bundles_post_ra>
